<compile_context>
chip_gen: v5e
topology: v5e:2x2
jax: 0.10.0
libtpu: 0.0.40
codegen_flags: <defaults>
</compile_context>

<pallas_src>
import math

import jax
import jax.numpy as jnp
from jax.experimental import pallas as pl
from jax.experimental.pallas import tpu as pltpu


# ------------------------------ kernels ------------------------------------

def _tgt_scale_kernel(x_ref, gd_ref, out_ref):
    # gd_ref holds [g; d] stacked on the sublane axis, broadcast over the tile.
    g = gd_ref[0:1, :]
    d = gd_ref[1:2, :]
    out_ref[...] = (g * x_ref[...] + d).astype(out_ref.dtype)


def _tgt_shift_kernel(x_ref, d_ref, out_ref):
    # No-scaling branch: out = x + d (g == 1 folded away).
    out_ref[...] = (x_ref[...] + d_ref[...]).astype(out_ref.dtype)


# ------------------------------ tiling helpers ------------------------------

# Per-block byte budget.  With double-buffered input + output this is ~8 MiB of
# VMEM -- well under default scoped limits on v5e/v6e and v7x's 64 MiB physical.
_TARGET_TILE_BYTES = 2 * 1024 * 1024


def _pack_lane_dense(x, vecs):
    """Repack (B, D) so the lane count is a multiple of 128 (lane-dense stores).

    Returns (packed_x, packed_vecs, unpack_fn).  vecs are (1, D) broadcast rows.
    """
    B, D = x.shape
    if D % 128 == 0:
        return x, list(vecs), (lambda y: y)
    L = (D * 128) // math.gcd(D, 128)          # lcm(D, 128)
    r = L // D
    if B % r == 0:
        # Pure contiguous reshape: zero padding overhead, zero extra traffic.
        xp = x.reshape(B // r, L)
        vp = [jnp.tile(v, (1, r)) for v in vecs]
        return xp, vp, (lambda y: y.reshape(B, D))
    # Last resort: pad D up to the next multiple of 128 and slice the output.
    Dp = pl.cdiv(D, 128) * 128
    pad = Dp - D
    xp = jnp.pad(x, ((0, 0), (0, pad)))
    vp = [jnp.pad(v, ((0, 0), (0, pad))) for v in vecs]
    return xp, vp, (lambda y: y[:, :D])


def _pick_tiles(rows, lanes, itemsize):
    """Byte-budgeted (row_tile, lane_tile) for a (rows, lanes) streaming kernel."""
    align = max(8, 32 // itemsize)             # sublane pack: 8 f32, 16 bf16, 32 i8

    # Lane tile (second grid axis) only if even a minimal-row block busts budget.
    tl = lanes
    if lanes > 128 and lanes % 128 == 0:
        max_tl = max(128, (_TARGET_TILE_BYTES // (align * itemsize)) // 128 * 128)
        if lanes > max_tl:
            tl = max_tl
            for cand in range(max_tl, 127, -128):
                if lanes % cand == 0 and cand * 2 >= max_tl:
                    tl = cand
                    break

    # Row tile under the byte budget.
    if rows <= align:
        return rows, tl
    budget = max(align, (_TARGET_TILE_BYTES // max(1, tl * itemsize)) // align * align)
    cap = min(rows, budget)
    if tl == lanes:
        # Single lane step: keep >= 2 row steps so v7x can use both TensorCores.
        cap = min(cap, max(align, rows // 2))
    cap = max(align, cap // align * align)
    tb = cap
    if rows % align == 0:
        # Prefer an exact divisor of rows (no masked tail block).
        for cand in range(cap, align - 1, -align):
            if rows % cand == 0 and cand * 2 >= cap:
                tb = cand
                break
    return tb, tl


def _run_elementwise(kernel, x, vecs, flops_per_elem, fuse_vecs=False):
    """Tiled, double-buffered broadcast op over the batch axis."""
    B, D = x.shape
    xp, vp, unpack = _pack_lane_dense(x, [v.astype(x.dtype) for v in vecs])
    rows, lanes = xp.shape
    itemsize = jnp.dtype(x.dtype).itemsize
    tb, tl = _pick_tiles(rows, lanes, itemsize)

    if fuse_vecs:
        vp = [jnp.concatenate(vp, axis=0)]     # single (n_vec, lanes) operand

    lane_tiled = tl != lanes
    if lane_tiled:
        grid = (pl.cdiv(rows, tb), pl.cdiv(lanes, tl))
        x_spec = pl.BlockSpec((tb, tl), lambda i, j: (i, j))
        v_specs = [pl.BlockSpec((v.shape[0], tl), lambda i, j: (0, j)) for v in vp]
        out_spec = pl.BlockSpec((tb, tl), lambda i, j: (i, j))
        dims = ("parallel", "parallel")
    else:
        grid = (pl.cdiv(rows, tb),)
        x_spec = pl.BlockSpec((tb, lanes), lambda i: (i, 0))
        v_specs = [pl.BlockSpec((v.shape[0], lanes), lambda i: (0, 0)) for v in vp]
        out_spec = pl.BlockSpec((tb, lanes), lambda i: (i, 0))
        dims = ("parallel",)

    # Note: input_output_aliases={0: 0} could be added when the caller donates x
    # (saves one B*D HBM buffer); omitted here since x is reused by the caller.
    out = pl.pallas_call(
        kernel,
        out_shape=jax.ShapeDtypeStruct((rows, lanes), x.dtype),
        grid=grid,
        in_specs=[x_spec] + v_specs,
        out_specs=out_spec,
        compiler_params=pltpu.CompilerParams(dimension_semantics=dims),
        cost_estimate=pl.CostEstimate(
            flops=int(flops_per_elem * B * D),
            transcendentals=0,
            bytes_accessed=int(2 * rows * lanes * itemsize)),
    )(xp, *vp)
    return unpack(out)


# ------------------------------ forward ------------------------------------

def tgt_forward(x, deltas, logit_gammas, initial, target, use_scaling=True, k=None):
    """x: (B, D).  deltas / logit_gammas: lists of (D,) float32 arrays.
    initial, target: Python ints.  Returns (out, d[, logit_g])."""
    # TODO(synk): `truncate(d, k)` (top-k sparsification) is undefined in the
    # reference module; only the k=None path is implemented.
    assert k is None, "truncate(d, k) not implemented (undefined in reference module)"
    B, D = x.shape
    zero = jnp.zeros((1, D), jnp.float32)

    if use_scaling:
        if initial == target:
            # Identity case: g = exp(0) = 1, d = 0 -> skip the kernel entirely.
            return x, zero, zero
        if initial == 0:
            d = deltas[target - 1].reshape(1, D)
            logit_g = logit_gammas[target - 1].reshape(1, D)
        elif target == 0:
            lg_i = logit_gammas[initial - 1].reshape(1, D)
            d = -jnp.exp(-lg_i) * deltas[initial - 1].reshape(1, D)
            logit_g = -lg_i
        else:
            lg_i = logit_gammas[initial - 1].reshape(1, D)
            lg_t = logit_gammas[target - 1].reshape(1, D)
            logit_g = lg_t - lg_i
            d = (-jnp.exp(-lg_i) * deltas[initial - 1].reshape(1, D)
                 + deltas[target - 1].reshape(1, D))
        g = jnp.exp(logit_g)
        out = _run_elementwise(_tgt_scale_kernel, x, [g, d],
                               flops_per_elem=2, fuse_vecs=True)
        return out, d, logit_g
    else:
        if initial == target:
            # Identity case: d = 0 -> skip the kernel entirely.
            return x, zero
        if initial == 0:
            d = deltas[target - 1].reshape(1, D)
        elif target == 0:
            d = -deltas[initial - 1].reshape(1, D)
        else:
            d = (-deltas[initial - 1] + deltas[target - 1]).reshape(1, D)
        out = _run_elementwise(_tgt_shift_kernel, x, [d], flops_per_elem=1)
        return out, d


# ------------------------------ reference ----------------------------------

def _reference(x, deltas, logit_gammas, initial, target, use_scaling):
    D = x.shape[1]
    if use_scaling:
        if initial == target:
            d = jnp.zeros((1, D)); lg = jnp.zeros((1, D))
        elif initial == 0:
            d = deltas[target - 1][None]; lg = logit_gammas[target - 1][None]
        elif target == 0:
            d = -jnp.exp(-logit_gammas[initial - 1][None]) * deltas[initial - 1][None]
            lg = -logit_gammas[initial - 1][None]
        else:
            lg = (logit_gammas[target - 1] - logit_gammas[initial - 1])[None]
            d = (-jnp.exp(-logit_gammas[initial - 1]) * deltas[initial - 1]
                 + deltas[target - 1])[None]
        return jnp.exp(lg) * x + d, d, lg
    else:
        if initial == target:
            d = jnp.zeros((1, D))
        elif initial == 0:
            d = deltas[target - 1][None]
        elif target == 0:
            d = -deltas[initial - 1][None]
        else:
            d = (-deltas[initial - 1] + deltas[target - 1])[None]
        return x + d, d


if __name__ == "__main__":
    key = jax.random.PRNGKey(0)

    def make_case(batch, n_dim, num_clusters, case_key):
        kx, kd, kg = jax.random.split(case_key, 3)
        x = jax.random.normal(kx, (batch, n_dim), dtype=jnp.float32)
        deltas = [jax.random.normal(jax.random.fold_in(kd, i), (n_dim,), dtype=jnp.float32)
                  for i in range(num_clusters - 1)]
        logit_gammas = [0.1 * jax.random.normal(jax.random.fold_in(kg, i), (n_dim,),
                                                dtype=jnp.float32)
                        for i in range(num_clusters - 1)]
        return x, deltas, logit_gammas

    ok = True
    cases = [
        (8, 32, 4),     # lane-dense lcm packing: (8, 32) -> (2, 128)
        (16, 256, 4),   # D % 128 == 0 path, >= 2 grid steps (megacore sharding)
        (6, 40, 4),     # pad-to-128 fallback (B not divisible by lcm ratio)
    ]
    for ci, (batch, n_dim, num_clusters) in enumerate(cases):
        x, deltas, logit_gammas = make_case(batch, n_dim, num_clusters,
                                            jax.random.fold_in(key, ci))
        # exercise all four branch cases, with and without scaling
        for use_scaling in (True, False):
            for (ini, tgt) in [(1, 1), (0, 2), (3, 0), (1, 2)]:
                res = tgt_forward(x, deltas, logit_gammas, ini, tgt,
                                  use_scaling=use_scaling)
                ref = _reference(x, deltas, logit_gammas, ini, tgt, use_scaling)
                for a, b in zip(res, ref):
                    a = jax.block_until_ready(a)
                    if not jnp.allclose(a, b, atol=1e-5, rtol=1e-5):
                        ok = False

    print("KERNEL_OK" if ok else "KERNEL_MISMATCH")
</pallas_src>

<mosaic_0001>
module attributes {stable_mosaic.version = 11 : i64} {
  func.func @_tgt_scale_kernel(%arg0: i32, %arg1: memref<2x128xf32, #tpu.memory_space<vmem>>, %arg2: memref<2x128xf32, #tpu.memory_space<vmem>>, %arg3: memref<2x128xf32, #tpu.memory_space<vmem>>) attributes {dimension_semantics = [#tpu.dimension_semantics<parallel>], iteration_bounds = array<i64: 1>, scalar_prefetch = 0 : i64, scratch_operands = 0 : i64, tpu.core_type = #tpu.core_type<tc>, window_params = [{transform_indices = @transform_0, window_bounds = array<i64: 2, 128>}, {pipeline_mode = #tpu.pipeline_mode<synchronous>, transform_indices = @transform_1, window_bounds = array<i64: 2, 128>}, {transform_indices = @transform_2, window_bounds = array<i64: 2, 128>}]} {
    %c0 = arith.constant 0 : index
    %c0_0 = arith.constant 0 : index
    %0 = vector.load %arg2[%c0, %c0_0] : memref<2x128xf32, #tpu.memory_space<vmem>>, vector<1x128xf32>
    %c1 = arith.constant 1 : index
    %c0_1 = arith.constant 0 : index
    %1 = vector.load %arg2[%c1, %c0_1] : memref<2x128xf32, #tpu.memory_space<vmem>>, vector<1x128xf32>
    %c0_2 = arith.constant 0 : index
    %c0_3 = arith.constant 0 : index
    %2 = vector.load %arg1[%c0_2, %c0_3] : memref<2x128xf32, #tpu.memory_space<vmem>>, vector<2x128xf32>
    %3 = vector.broadcast %0 : vector<1x128xf32> to vector<2x128xf32>
    %4 = arith.mulf %3, %2 : vector<2x128xf32>
    %5 = vector.broadcast %1 : vector<1x128xf32> to vector<2x128xf32>
    %6 = arith.addf %4, %5 : vector<2x128xf32>
    %c0_4 = arith.constant 0 : index
    %c0_5 = arith.constant 0 : index
    %7 = vector.load %arg3[%c0_4, %c0_5] : memref<2x128xf32, #tpu.memory_space<vmem>>, vector<2x128xf32>
    tpu.vector_store %arg3[%c0_4, %c0_5], %6 {strides = array<i32>} : memref<2x128xf32, #tpu.memory_space<vmem>>, vector<2x128xf32>,
    return
  }
  func.func @transform_0(%arg0: i32) -> (i32, i32) {
    %c0_i32 = arith.constant 0 : i32
    %c0_i32_0 = arith.constant 0 : i32
    return %arg0, %c0_i32 : i32, i32
  }
  func.func @transform_1(%arg0: i32) -> (i32, i32) {
    %c0_i32 = arith.constant 0 : i32
    %c0_i32_0 = arith.constant 0 : i32
    %c0_i32_1 = arith.constant 0 : i32
    return %c0_i32, %c0_i32_0 : i32, i32
  }
  func.func @transform_2(%arg0: i32) -> (i32, i32) {
    %c0_i32 = arith.constant 0 : i32
    %c0_i32_0 = arith.constant 0 : i32
    return %arg0, %c0_i32 : i32, i32
  }
}

</mosaic_0001>

<bundles_post_ra>
// kernel: tpu_custom_call.1
= control target key start
LH: loop header
LB: loop body
LE: loop exit
PB: predicated region body
PF: predicated region fallthrough
CT: control target
= control target key end

     0   :  { %7 = vsyncpa [#allocation3], 0  ;;  %s176_s0 = inlined_call_operand.hbm [shape: f32[2,128], index: 0, kind: input, shape index: {}]   ;;  %s177_s1 = inlined_call_operand.hbm [shape: f32[2,128], index: 1, kind: input, shape index: {}]   ;;  %s178_s2 = inlined_call_operand.hbm [shape: f32[2,128], index: 2, kind: output, shape index: {}]  }
   0x1   :  { %8 = vsyncpa [#allocation6], 0 }
   0x2   :  { %9 = vsyncpa [#allocation4], 0  ;;  %s15_s11 = sshll.u32 %s176_s0, 4  ;;  %s149_s12 = smov [#allocation2]   ;;  %s16_s11 = int_to_ptr.hbm [resolvable:$true] %s15_s11 }
   0x3   :  { %s17_s13 = sshll.u32 %s149_s12, 4  ;;  %s26_s16 = sshll.u32 %s177_s1, 4  ;;  %s18_s13 = int_to_ptr.vmem [resolvable:$true] %s17_s13  ;;  %s27_s16 = int_to_ptr.hbm [resolvable:$true] %s26_s16 }
   0x4   :  { %20 = dma.hbm_to_vmem [thread:$0]  %s16_s11, 32, %s18_s13, [#allocation3]  }
   0x5   :  { %s150_s17 = smov [#allocation5]  }
   0x6   :  { %s28_s18 = sshll.u32 %s150_s17, 4  ;;  %s29_s18 = int_to_ptr.vmem [resolvable:$true] %s28_s18 }
   0x7   :  { %31 = dma.hbm_to_vmem [thread:$0]  %s27_s16, 32, %s29_s18, [#allocation6]  }
   0x8   :  { %143 = dma.done.wait [#allocation3], 32  }
   0x9   :  { %144 = vsyncadd [#allocation3], 4294967264 }
   0xa   :  { %145 = dma.done.wait [#allocation6], 32  }
   0xb   :  { %146 = vsyncadd [#allocation6], 4294967264  ;;  %v42_v0 = vld [vmem:[#allocation2] sm:$0x3]  ;;  %v69_v1 = vld [vmem:[#allocation5] ss:$0 sm:$0xff] }
   0xc   :  { %v70_v2 = vld [vmem:[#allocation5 + $0x1] ss:$0 sm:$0xff]  ;;  %s151_s0 = smov [#allocation7]   ;;  %s55_s22 = sshll.u32 %s178_s2, 4  ;;  %v44_v3 = vmul.f32 %v69_v1, %v42_v0  ;;  %s56_s22 = int_to_ptr.hbm [resolvable:$true] %s55_s22 }
   0xd   :  { %s53_s19 = sshll.u32 %s151_s0, 4  ;;  %s54_s19 = int_to_ptr.vmem [resolvable:$true] %s53_s19 }
   0xe   :  { %v46_v4 = vadd.f32 %v70_v2, %v44_v3 }
  0x10   :  { %47 = vst [vmem:[#allocation7] sm:$0x3] %v46_v4 }
  0x11   :  { %58 = dma.vmem_to_hbm [thread:$0]  %s54_s19, 32, %s56_s22, [#allocation4]  }
  0x12   :  { %147 = dma.done.wait [#allocation4], 32  }
  0x13   :  { %148 = vsyncadd [#allocation4], 4294967264 }
  0x14   :  { %63 = vsyncpa [#allocation3], 1 }
  0x15   :  { %64 = vsyncpa [#allocation6], 1 }
  0x16   :  { %65 = vsyncpa [#allocation4], 1 }

</bundles_post_ra>
